<compile_context>
chip_gen: v7x
topology: tpu7x:2x2x1
jax: 0.10.0
libtpu: 0.0.40
codegen_flags: <defaults>
</compile_context>

<pallas_src>
import functools

import jax
import jax.numpy as jnp
from jax import lax
from jax.experimental import pallas as pl
from jax.experimental.pallas import tpu as pltpu


def _round_up(x, m):
    return ((x + m - 1) // m) * m


def _linear_kernel(x_ref, w_ref, b_ref, o_ref):
    # x_ref: (bb, Dp_in)  w_ref: (bn, Dp_in)  (PyTorch [out, in] layout)
    # b_ref: (1, bn)      o_ref: (bb, bn)
    # Contract on the last dim of both operands -> x @ W.T with no transpose.
    y = lax.dot_general(
        x_ref[...],
        w_ref[...],
        dimension_numbers=(((1,), (1,)), ((), ())),
        preferred_element_type=jnp.float32,
    )
    o_ref[...] = (y + b_ref[...].astype(jnp.float32)).astype(o_ref.dtype)


_VMEM_TILE_BUDGET = 24 * 1024 * 1024  # double-buffered tile budget (all gens)


@functools.partial(jax.jit, static_argnames=("block_b", "block_n"))
def lti_forward(s, x, weight, bias, *, block_b=256, block_n=256):
    """Pallas implementation of LTISystem.forward(s, x) == Linear(x).

    `s` is accepted for API parity but unused, matching the PyTorch module.
    `weight` uses PyTorch nn.Linear layout: [out_features, in_features].
    """
    del s  # unused, same as the reference module
    B, d_in = x.shape
    d_out, d_in_w = weight.shape
    assert d_in_w == d_in, "weight in_features must match x features"
    assert bias.shape == (d_out,)
    assert weight.dtype == x.dtype and bias.dtype == x.dtype, "dtype mismatch"
    assert block_b % 8 == 0 and block_n % 128 == 0

    itemsize = jnp.dtype(x.dtype).itemsize

    # Lane-dense padding targets: features -> multiples of 128.
    dp_in = _round_up(d_in, 128)
    dp_out = _round_up(d_out, 128)

    # ---------------- tile-size derivation ------------------------------
    bn = min(block_n, dp_out)
    while dp_out % bn:
        bn -= 128

    n_blocks_b = pl.cdiv(B, block_b)
    bb = _round_up(pl.cdiv(B, n_blocks_b), 8)  # <= block_b, padding < 8*n_blocks

    def vmem_bytes(bb_, bn_):
        # double-buffered x, w, bias and out tiles
        return 2 * itemsize * (bb_ * dp_in + bn_ * dp_in + 8 * bn_ + bb_ * bn_)

    # Shrink tiles until the pipelined footprint fits the cross-gen budget.
    while vmem_bytes(bb, bn) > _VMEM_TILE_BUDGET:
        if bn > 128:
            bn -= 128
            while dp_out % bn:
                bn -= 128
        elif bb > 8:
            n_blocks_b *= 2
            bb = _round_up(pl.cdiv(B, n_blocks_b), 8)
        else:
            break  # TODO(synk): huge dp_in would need K-axis tiling.

    # Guarantee >=2 grid blocks on a parallel axis so both v7x TCs get work.
    if dp_out == bn and B <= bb and B >= 16:
        bb = _round_up(pl.cdiv(B, 2), 8)

    bp = _round_up(B, bb)
    n_i = bp // bb        # batch blocks
    n_j = dp_out // bn    # output-feature blocks

    # ---------------- padding (skipped when already aligned) ------------
    if bp == B and dp_in == d_in:
        x_p = x
    else:
        x_p = jnp.pad(x, ((0, bp - B), (0, dp_in - d_in)))
    if dp_out == d_out and dp_in == d_in:
        w_p = weight
    else:
        w_p = jnp.pad(weight, ((0, dp_out - d_out), (0, dp_in - d_in)))
    b2 = bias.reshape(1, d_out)
    b_p = b2 if dp_out == d_out else jnp.pad(b2, ((0, 0), (0, dp_out - d_out)))

    x_bytes = bp * dp_in * itemsize
    w_bytes = dp_out * dp_in * itemsize
    b_bytes = dp_out * itemsize
    out_bytes = bp * dp_out * itemsize

    # ---------------- grid order ----------------------------------------
    # The operand whose block index is constant along the inner axis is kept
    # VMEM-resident (fetched once); the other streams n_outer times.  Pick the
    # order that minimizes total HBM bytes (ties -> weight-resident order).
    batch_inner = (n_j - 1) * x_bytes <= (n_i - 1) * w_bytes
    if batch_inner:
        grid = (n_j, n_i)                       # feature outer, batch inner
        x_map = lambda j, i: (i, 0)
        w_map = lambda j, i: (j, 0)             # constant along inner axis
        b_map = lambda j, i: (0, j)
        o_map = lambda j, i: (i, j)
        bytes_accessed = n_j * x_bytes + w_bytes + b_bytes + out_bytes
    else:
        grid = (n_i, n_j)                       # batch outer, feature inner
        x_map = lambda i, j: (i, 0)             # constant along inner axis
        w_map = lambda i, j: (j, 0)
        b_map = lambda i, j: (0, j)
        o_map = lambda i, j: (i, j)
        bytes_accessed = x_bytes + n_i * (w_bytes + b_bytes) + out_bytes

    cost = pl.CostEstimate(
        flops=2 * bp * dp_in * dp_out,
        transcendentals=0,
        bytes_accessed=int(bytes_accessed),
    )

    vmem_limit = int(min(max(2 * vmem_bytes(bb, bn), 32 * 1024 * 1024),
                         64 * 1024 * 1024))

    out_p = pl.pallas_call(
        _linear_kernel,
        out_shape=jax.ShapeDtypeStruct((bp, dp_out), x.dtype),
        grid_spec=pltpu.PrefetchScalarGridSpec(
            num_scalar_prefetch=0,
            grid=grid,
            in_specs=[
                pl.BlockSpec((bb, dp_in), x_map),    # x tile
                pl.BlockSpec((bn, dp_in), w_map),    # weight slab ([out, in])
                pl.BlockSpec((1, bn), b_map),        # bias row for this tile
            ],
            out_specs=pl.BlockSpec((bb, bn), o_map),
        ),
        compiler_params=pltpu.CompilerParams(
            dimension_semantics=("parallel", "parallel"),
            vmem_limit_bytes=vmem_limit,
        ),
        cost_estimate=cost,
    )(x_p, w_p, b_p)

    if bp == B and dp_out == d_out:
        return out_p
    return out_p[:B, :d_out]


if __name__ == "__main__":
    key = jax.random.PRNGKey(0)

    def run_case(batch, dim, key):
        k_w, k_b, k_x, k_s = jax.random.split(key, 4)
        # Deterministic init mimicking nn.Linear: U(-1/sqrt(in), 1/sqrt(in)).
        bound = 1.0 / (dim ** 0.5)
        weight = jax.random.uniform(k_w, (dim, dim), jnp.float32, -bound, bound)
        bias = jax.random.uniform(k_b, (dim,), jnp.float32, -bound, bound)
        x = jax.random.normal(k_x, (batch, dim), jnp.float32)
        s = jax.random.normal(k_s, (batch,), jnp.float32)  # ignored, like PyTorch

        out = lti_forward(s, x, weight, bias)
        out = jax.block_until_ready(out)

        ref = lax.dot_general(
            x, weight, (((1,), (1,)), ((), ())),
            precision=lax.Precision.HIGHEST) + bias
        assert out.shape == (batch, dim)
        assert jnp.allclose(out, ref, atol=1e-4, rtol=1e-4), "mismatch vs reference"

    k0, k1, k2 = jax.random.split(key, 3)
    # Small shape consistent with the module (dim is a free parameter).
    run_case(batch=8, dim=32, key=k0)
    # Exercises padding, megacore batch-split and the weight-resident order.
    run_case(batch=136, dim=96, key=k1)
    # Aligned, multi-feature-block shape; exercises the x-resident grid order.
    run_case(batch=64, dim=384, key=k2)

    print("KERNEL_OK")
</pallas_src>

<mosaic_0001>
module attributes {stable_mosaic.version = 11 : i64} {
  func.func @_linear_kernel(%arg0: i32, %arg1: i32, %arg2: memref<8x128xf32, #tpu.memory_space<vmem>>, %arg3: memref<128x128xf32, #tpu.memory_space<vmem>>, %arg4: memref<1x128xf32, #tpu.memory_space<vmem>>, %arg5: memref<8x128xf32, #tpu.memory_space<vmem>>) attributes {dimension_semantics = [#tpu.dimension_semantics<parallel>, #tpu.dimension_semantics<parallel>], iteration_bounds = array<i64: 1, 1>, scalar_prefetch = 0 : i64, scratch_operands = 0 : i64, tpu.core_type = #tpu.core_type<tc>, window_params = [{transform_indices = @transform_0, window_bounds = array<i64: 8, 128>}, {transform_indices = @transform_1, window_bounds = array<i64: 128, 128>}, {transform_indices = @transform_2, window_bounds = array<i64: 1, 128>}, {transform_indices = @transform_3, window_bounds = array<i64: 8, 128>}]} {
    %c0 = arith.constant 0 : index
    %c0_0 = arith.constant 0 : index
    %0 = vector.load %arg2[%c0, %c0_0] : memref<8x128xf32, #tpu.memory_space<vmem>>, vector<8x128xf32>
    %c0_1 = arith.constant 0 : index
    %c0_2 = arith.constant 0 : index
    %1 = vector.load %arg3[%c0_1, %c0_2] : memref<128x128xf32, #tpu.memory_space<vmem>>, vector<128x128xf32>
    %cst = arith.constant dense<0.000000e+00> : vector<8x128xf32>
    %2 = tpu.matmul %0, %1, %cst {dimension_numbers = #tpu.dot_dimension_numbers<[1], [1], [0], [0], [0, 0, 1, 0], [], []>} : vector<8x128xf32>, vector<128x128xf32>, vector<8x128xf32> -> vector<8x128xf32>
    %c0_3 = arith.constant 0 : index
    %c0_4 = arith.constant 0 : index
    %3 = vector.load %arg4[%c0_3, %c0_4] : memref<1x128xf32, #tpu.memory_space<vmem>>, vector<1x128xf32>
    %4 = vector.broadcast %3 : vector<1x128xf32> to vector<8x128xf32>
    %5 = arith.addf %2, %4 : vector<8x128xf32>
    %c0_5 = arith.constant 0 : index
    %c0_6 = arith.constant 0 : index
    %6 = vector.load %arg5[%c0_5, %c0_6] : memref<8x128xf32, #tpu.memory_space<vmem>>, vector<8x128xf32>
    tpu.vector_store %arg5[%c0_5, %c0_6], %5 {strides = array<i32>} : memref<8x128xf32, #tpu.memory_space<vmem>>, vector<8x128xf32>,
    return
  }
  func.func @transform_0(%arg0: i32, %arg1: i32) -> (i32, i32) {
    %c0_i32 = arith.constant 0 : i32
    %c0_i32_0 = arith.constant 0 : i32
    return %arg1, %c0_i32 : i32, i32
  }
  func.func @transform_1(%arg0: i32, %arg1: i32) -> (i32, i32) {
    %c0_i32 = arith.constant 0 : i32
    %c0_i32_0 = arith.constant 0 : i32
    return %arg0, %c0_i32 : i32, i32
  }
  func.func @transform_2(%arg0: i32, %arg1: i32) -> (i32, i32) {
    %c0_i32 = arith.constant 0 : i32
    %c0_i32_0 = arith.constant 0 : i32
    return %c0_i32, %arg0 : i32, i32
  }
  func.func @transform_3(%arg0: i32, %arg1: i32) -> (i32, i32) {
    %c0_i32 = arith.constant 0 : i32
    return %arg1, %arg0 : i32, i32
  }
}

</mosaic_0001>

<bundles_post_ra>
// kernel: lti_forward.1
= control target key start
LH: loop header
LB: loop body
LE: loop exit
PB: predicated region body
PF: predicated region fallthrough
CT: control target
= control target key end

     0   :  { %v229_v2 = vmov 0.0|0.0   ;;  %vm230_vm0 = vmmov 0   ;;  %v231_v4 = vmov 0.0   ;;  %s319_s0 = inlined_call_operand.vmem [shape: f32[8,128], index: 0, kind: input, shape index: {}]   ;;  %s320_s1 = inlined_call_operand.vmem [shape: f32[128,128], index: 1, kind: input, shape index: {}]   ;;  %s321_s2 = inlined_call_operand.vmem [shape: f32[1,128], index: 2, kind: input, shape index: {}]   ;;  %s322_s3 = inlined_call_operand.hbm [shape: f32[8,128], index: 3, kind: output, shape index: {}]  }
   0x1   :  { %v16_v0 = vld [vmem:[%s320_s1] sm:$0xff]  ;;  %v17_v1 = vld [vmem:[%s320_s1 + $0x8] sm:$0xff]  ;;  %177 = vmatprep.subr.bf16.mxu0 %v229_v2  ;;  %174 = vmatprep.mubr.msk.f32.mxu0 %vm230_vm0, %v231_v4  ;;  %v18_v5 = vld [vmem:[%s320_s1 + $0x10] sm:$0xff] }
   0x2   :  { %v178_v3 = vpack.c.bf16 %v17_v1, %v16_v0  ;;  %v19_v6 = vld [vmem:[%s320_s1 + $0x18] sm:$0xff] }
   0x4   :  { %179 = vmatpush3.bf16.xpose.msra.mxu0 %v178_v3 }
   0x5   :  { %180 = vmatprep.subr.bf16.mxu0 %v229_v2 }
   0x6   :  { %8 = vsyncpa [#allocation3], 0  ;;  %v181_v7 = vpack.c.bf16 %v19_v6, %v18_v5  ;;  %v20_v8 = vld [vmem:[%s320_s1 + $0x20] sm:$0xff]  ;;  %v21_v9 = vld [vmem:[%s320_s1 + $0x28] sm:$0xff]  ;;  %s232_s21 = smov [#allocation2]  }
   0x7   :  { %v184_v10 = vpack.c.bf16 %v21_v9, %v20_v8  ;;  %v22_v11 = vld [vmem:[%s320_s1 + $0x30] sm:$0xff]  ;;  %v23_v12 = vld [vmem:[%s320_s1 + $0x38] sm:$0xff]  ;;  %v24_v14 = vld [vmem:[%s320_s1 + $0x40] sm:$0xff]  ;;  %s116_s22 = sshll.u32 %s232_s21, 4  ;;  %s117_s22 = int_to_ptr.vmem [resolvable:$true] %s116_s22 }
   0x8   :  { %v187_v13 = vpack.c.bf16 %v23_v12, %v22_v11  ;;  %v25_v15 = vld [vmem:[%s320_s1 + $0x48] sm:$0xff]  ;;  %v26_v17 = vld [vmem:[%s320_s1 + $0x50] sm:$0xff]  ;;  %v27_v18 = vld [vmem:[%s320_s1 + $0x58] sm:$0xff]  ;;  %s205_s23 = scalar_lea.vmem %s117_s22, 128  ;;  %p210_p1 = scmp.lt.s32.totalorder %s117_s22, %s117_s22 }
   0x9   :  { %v190_v16 = vpack.c.bf16 %v25_v15, %v24_v14  ;;  %v193_v19 = vpack.c.bf16 %v27_v18, %v26_v17  ;;  %v28_v20 = vld [vmem:[%s320_s1 + $0x60] sm:$0xff]  ;;  %v29_v21 = vld [vmem:[%s320_s1 + $0x68] sm:$0xff]  ;;  %v30_v23 = vld [vmem:[%s320_s1 + $0x70] sm:$0xff]  ;;  %p206_p0 = scmp.ne.s32.totalorder %s117_s22, %s205_s23  ;;  %p211_p2 = scmp.lt.s32.totalorder %s205_s23, %s205_s23 }
   0xa   :  { %v196_v22 = vpack.c.bf16 %v29_v21, %v28_v20  ;;  %v31_v24 = vld [vmem:[%s320_s1 + $0x78] sm:$0xff]  ;;  %v15_v26 = vld [vmem:[%s319_s0] sm:$0xff] }
   0xb   :  { %v199_v25 = vpack.c.bf16 %v31_v24, %v30_v23  ;;  %v124_v27 = vld [vmem:[%s321_s2] ss:$0 sm:$0xff]  ;;  %p212_p3 = por %p211_p2, %p210_p1 }
   0xc   :  { %182 = vmatpush3.bf16.xpose.msra.mxu0 %v181_v7 }
   0xd   :  { %183 = vmatprep.subr.bf16.mxu0 %v229_v2  ;;  %p213_p4 = pnand %p212_p3, %p206_p0 }
  0x14   :  { %185 = vmatpush3.bf16.xpose.msra.mxu0 %v184_v10 }
  0x15   :  { %186 = vmatprep.subr.bf16.mxu0 %v229_v2 }
  0x1c   :  { %188 = vmatpush3.bf16.xpose.msra.mxu0 %v187_v13 }
  0x1d   :  { %189 = vmatprep.subr.bf16.mxu0 %v229_v2 }
  0x24   :  { %191 = vmatpush3.bf16.xpose.msra.mxu0 %v190_v16 }
  0x25   :  { %192 = vmatprep.subr.bf16.mxu0 %v229_v2 }
  0x2c   :  { %194 = vmatpush3.bf16.xpose.msra.mxu0 %v193_v19 }
  0x2d   :  { %195 = vmatprep.subr.bf16.mxu0 %v229_v2 }
  0x34   :  { %197 = vmatpush3.bf16.xpose.msra.mxu0 %v196_v22 }
  0x35   :  { %198 = vmatprep.subr.bf16.mxu0 %v229_v2 }
  0x3c   :  { %200 = vmatpush3.bf16.xpose.msra.mxu0 %v199_v25 }
  0x43   :  { %175 = vmatmul.mubr.f32.vlgmr.msra.gmra.mrb[0].mxu0 %v15_v26 }
 0x116   :  { %v105_v28 = vpop.f32.mrb[0].mxu0 }
 0x117   :  { %v106_v29 = vadd.f32 %v124_v27, %v105_v28  ;;  %v176_v30 = vpop.f32.mrb[1].mxu0 }
 0x119   :  { %109 = vst [vmem:[#allocation2] sm:$0xff] %v106_v29 }
 0x11a   :  { %216 = shalt.err (!%p213_p4)
}
 0x11b   :  { %s217_s24 = scalar_lea.hbm %s322_s3, 128 }
 0x11c   :  { %p218_p5 = scmp.ne.s32.totalorder %s322_s3, %s217_s24  ;;  %p221_p6 = scmp.lt.u32.totalorder %s217_s24, %s322_s3 }
 0x11e   :  { %p223_p7 = pnand %p221_p6, %p218_p5 }
 0x120   :  { %226 = shalt.err (!%p223_p7)
}
 0x121   :  { %119 = dma.vmem_to_hbm [thread:$0]  %s117_s22, 128, %s322_s3, [#allocation3]  }
 0x122   :  { %227 = dma.done.wait [#allocation3], 128  }
 0x123   :  { %228 = vsyncadd [#allocation3], 4294967168 }
 0x124   :  { %123 = vsyncpa [#allocation3], 1 }

</bundles_post_ra>
